<compile_context>
chip_gen: v7x
topology: tpu7x:2x2x1
jax: 0.10.0
libtpu: 0.0.40
codegen_flags: <defaults>
</compile_context>

<pallas_src>
import math
import functools

import jax
import jax.numpy as jnp
from jax.experimental import pallas as pl
from jax.experimental.pallas import tpu as pltpu

_MIB = 1024 * 1024


# ----------------------------------------------------------------------------
# Helpers
# ----------------------------------------------------------------------------
def _const_index_map(ndim):
    def imap(*_):
        return (0,) * ndim
    return imap


def _const_spec(shape):
    """BlockSpec for a weight that stays resident (constant block index)."""
    return pl.BlockSpec(shape, _const_index_map(len(shape)))


def _device_vmem_bytes(default=64 * _MIB):
    try:
        return int(pltpu.get_tpu_info().vmem_capacity_bytes)
    except Exception:
        return default


def _vmem_limit(bytes_needed):
    """Derive vmem_limit_bytes from actual tile sizes, clamped to the device."""
    cap = max(_device_vmem_bytes(default=100 * _MIB) - 8 * _MIB, 32 * _MIB)
    return int(min(max(int(bytes_needed), 32 * _MIB), cap))


def _pick_tq(S):
    """Query-tile size: full S when short; generation-aware for long seqs."""
    if S <= 512:
        return S
    tq = 256 if _device_vmem_bytes() <= 64 * _MIB else 512
    while tq > 8 and S % tq:
        tq //= 2
    return max(tq, 8)


# ----------------------------------------------------------------------------
# Pallas kernel 1: hoisted K/V projection, once per (batch, layer).
# Emits K and V in head-major (H, S, d_k) bf16 layout.
# ----------------------------------------------------------------------------
def kv_projection_kernel(x_ref, wkv_ref, bkv_ref, k_ref, v_ref,
                         *, num_heads, d_k, d_model):
    f32, bf16 = jnp.float32, jnp.bfloat16
    D = d_model
    x = x_ref[0]                                                    # (S, D) bf16
    kv = (jnp.dot(x, wkv_ref[...], preferred_element_type=f32)
          + bkv_ref[...]).astype(bf16)                              # (S, 2D)
    # Split into per-head blocks along a new leading axis (no lane concat).
    k_ref[0] = jnp.stack(
        [kv[:, h * d_k:(h + 1) * d_k] for h in range(num_heads)], axis=0)
    v_ref[0] = jnp.stack(
        [kv[:, D + h * d_k:D + (h + 1) * d_k] for h in range(num_heads)], axis=0)


def kv_projection(x, w_kv, b_kv, num_heads):
    B, S, D = x.shape
    d_k = D // num_heads
    out_sd = jax.ShapeDtypeStruct((B, num_heads, S, d_k), jnp.bfloat16)

    weight_bytes = int(w_kv.size) * 2 + int(b_kv.size) * 4
    io_bytes = S * D * 2 + 2 * num_heads * S * d_k * 2
    vmem_need = 2 * (weight_bytes + io_bytes) + S * 2 * D * 6

    flops = 4 * B * S * D * D
    bytes_accessed = int(B * S * D * 2 + weight_bytes + 2 * B * S * D * 2)

    return pl.pallas_call(
        functools.partial(kv_projection_kernel, num_heads=num_heads,
                          d_k=d_k, d_model=D),
        out_shape=(out_sd, out_sd),
        grid=(B,),
        in_specs=[
            pl.BlockSpec((1, S, D), lambda b: (b, 0, 0)),
            _const_spec((D, 2 * D)),
            _const_spec((1, 2 * D)),
        ],
        out_specs=(
            pl.BlockSpec((1, num_heads, S, d_k), lambda b: (b, 0, 0, 0)),
            pl.BlockSpec((1, num_heads, S, d_k), lambda b: (b, 0, 0, 0)),
        ),
        compiler_params=pltpu.CompilerParams(
            dimension_semantics=("parallel",),
            vmem_limit_bytes=_vmem_limit(vmem_need)),
        cost_estimate=pl.CostEstimate(flops=int(flops), transcendentals=0,
                                      bytes_accessed=bytes_accessed),
    )(x, w_kv, b_kv)


# ----------------------------------------------------------------------------
# Pallas kernel 2: attention (with precomputed K/V) + residual/LN + FFN + LN
# for one (batch, query-tile).
# ----------------------------------------------------------------------------
def encoder_layer_kernel(xq_ref, k_ref, v_ref,
                         wq_ref, bq_ref, wo_ref, bo_ref,
                         g1_ref, be1_ref,
                         w1_ref, b1_ref, w2_ref, b2_ref,
                         g2_ref, be2_ref,
                         o_ref, *, num_heads, d_k):
    f32, bf16 = jnp.float32, jnp.bfloat16

    xq = xq_ref[0]                       # (tq, D) bf16 — query-tile activations
    k_heads = k_ref[0]                   # (H, S, d_k) bf16 — precomputed
    v_heads = v_ref[0]                   # (H, S, d_k) bf16 — precomputed

    # --- Q projection (1/sqrt(d_k) folded into wq/bq at prepare time) --------
    q = (jnp.dot(xq, wq_ref[...], preferred_element_type=f32)
         + bq_ref[...]).astype(bf16)                                # (tq, D)
    q_heads = jnp.stack(
        [q[:, h * d_k:(h + 1) * d_k] for h in range(num_heads)], axis=0)

    # --- head-batched attention ----------------------------------------------
    s = jnp.einsum('hqd,hkd->hqk', q_heads, k_heads,
                   preferred_element_type=f32)                      # (H, tq, S)
    # TODO(synk): attention-mask path not implemented (mask=None only).
    s = s - jnp.max(s, axis=-1, keepdims=True)
    p = jnp.exp(s)
    denom = jnp.sum(p, axis=-1, keepdims=True)
    p = p * pl.reciprocal(denom, approx=True)                       # EUP slot
    ctx = jnp.einsum('hqk,hkd->hqd', p.astype(bf16), v_heads,
                     preferred_element_type=f32)                    # (H, tq, dk)

    # Output projection: accumulate heads through W_o row-blocks (no concat).
    attn = jnp.einsum('hqd,hde->hqe', ctx.astype(bf16), wo_ref[...],
                      preferred_element_type=f32)                   # (H, tq, D)
    attn_out = jnp.sum(attn, axis=0) + bo_ref[...]                  # (tq, D)

    # --- residual + LayerNorm (torch default eps = 1e-5), float32 math -------
    def layernorm(v, g_ref, b_ref):
        mu = jnp.mean(v, axis=-1, keepdims=True)
        var = jnp.mean((v - mu) ** 2, axis=-1, keepdims=True)
        return (v - mu) * jax.lax.rsqrt(var + 1e-5) * g_ref[...] + b_ref[...]

    x1 = layernorm(xq.astype(f32) + attn_out, g1_ref, be1_ref)      # (tq, D)

    # --- feed-forward ----------------------------------------------------------
    # TODO(synk): d_ff chunking for very large d_ff on 64-MiB-VMEM parts.
    h1 = jnp.dot(x1.astype(bf16), w1_ref[...],
                 preferred_element_type=f32) + b1_ref[...]          # (tq, d_ff)
    h1 = jnp.maximum(h1, 0.0)                                       # ReLU
    ff = jnp.dot(h1.astype(bf16), w2_ref[...],
                 preferred_element_type=f32) + b2_ref[...]          # (tq, D)

    o_ref[0] = layernorm(x1 + ff, g2_ref, be2_ref).astype(o_ref.dtype)


_LAYER_ARG_ORDER = ['wq', 'bq', 'wo_r', 'bo', 'g1', 'be1',
                    'w1', 'b1', 'w2', 'b2', 'g2', 'be2']


def encoder_layer(x, k, v, lp, num_heads, *, tq=None):
    B, S, D = x.shape
    assert D % num_heads == 0
    d_k = D // num_heads
    d_ff = lp['w1'].shape[1]
    H = num_heads

    if tq is None:
        tq = _pick_tq(S)
    assert S % tq == 0
    n_q = S // tq

    in_specs = [
        pl.BlockSpec((1, tq, D), lambda b, qi: (b, qi, 0)),        # query tile
        pl.BlockSpec((1, H, S, d_k), lambda b, qi: (b, 0, 0, 0)),  # K (resident)
        pl.BlockSpec((1, H, S, d_k), lambda b, qi: (b, 0, 0, 0)),  # V (resident)
    ]
    args = [x, k, v]
    for name in _LAYER_ARG_ORDER:
        w = lp[name]
        in_specs.append(_const_spec(w.shape))
        args.append(w)

    out_spec = pl.BlockSpec((1, tq, D), lambda b, qi: (b, qi, 0))

    # VMEM budget derived from actual tile sizes (double-buffered IO/weights
    # plus live intermediates), clamped to the device's VMEM.
    weight_bytes = sum(int(lp[n].size) * lp[n].dtype.itemsize
                       for n in _LAYER_ARG_ORDER)
    io_bytes = 2 * tq * D * 2 + 2 * H * S * d_k * 2
    inter_bytes = (H * tq * S * 6 + H * tq * d_k * 6 + H * tq * D * 4
                   + tq * d_ff * 6 + 8 * tq * D * 4)
    vmem_need = 2 * (weight_bytes + io_bytes) + inter_bytes

    flops = 2 * B * S * (2 * D * D + 2 * D * d_ff) + 4 * B * H * S * S * d_k
    transcendentals = B * H * S * S
    bytes_accessed = 2 * B * S * D * 2 + 2 * B * H * S * d_k * 2 + weight_bytes

    return pl.pallas_call(
        functools.partial(encoder_layer_kernel, num_heads=H, d_k=d_k),
        out_shape=jax.ShapeDtypeStruct((B, S, D), jnp.bfloat16),
        grid=(B, n_q),
        in_specs=in_specs,
        out_specs=out_spec,
        compiler_params=pltpu.CompilerParams(
            dimension_semantics=("parallel", "parallel"),
            vmem_limit_bytes=_vmem_limit(vmem_need)),
        cost_estimate=pl.CostEstimate(flops=int(flops),
                                      transcendentals=int(transcendentals),
                                      bytes_accessed=int(bytes_accessed)),
    )(*args)


# ----------------------------------------------------------------------------
# Parameter initialization (deterministic, synthetic) and one-time preparation.
# ----------------------------------------------------------------------------
def init_params(key, vocab_size, d_model, num_heads, d_ff, num_layers,
                max_seq_len):
    keys = jax.random.split(key, 2 + num_layers)
    params = {
        'token_embedding': 0.02 * jax.random.normal(
            keys[0], (vocab_size, d_model), jnp.float32),
        'position_embedding': 0.02 * jax.random.normal(
            keys[1], (max_seq_len, d_model), jnp.float32),
        'layers': [],
    }
    for li in range(num_layers):
        lk = jax.random.split(keys[2 + li], 8)
        layer = {
            'wq': 0.02 * jax.random.normal(lk[0], (d_model, d_model)),
            'bq': jnp.zeros((1, d_model), jnp.float32),
            'wk': 0.02 * jax.random.normal(lk[1], (d_model, d_model)),
            'bk': jnp.zeros((1, d_model), jnp.float32),
            'wv': 0.02 * jax.random.normal(lk[2], (d_model, d_model)),
            'bv': jnp.zeros((1, d_model), jnp.float32),
            'wo': 0.02 * jax.random.normal(lk[3], (d_model, d_model)),
            'bo': jnp.zeros((1, d_model), jnp.float32),
            'g1': jnp.ones((1, d_model), jnp.float32),
            'be1': jnp.zeros((1, d_model), jnp.float32),
            'w1': 0.02 * jax.random.normal(lk[4], (d_model, d_ff)),
            'b1': jnp.zeros((1, d_ff), jnp.float32),
            'w2': 0.02 * jax.random.normal(lk[5], (d_ff, d_model)),
            'b2': jnp.zeros((1, d_model), jnp.float32),
            'g2': jnp.ones((1, d_model), jnp.float32),
            'be2': jnp.zeros((1, d_model), jnp.float32),
        }
        params['layers'].append(
            {k: v.astype(jnp.float32) for k, v in layer.items()})
    return params


def prepare_params(params, num_heads):
    """One-time fusion: fold 1/sqrt(d_k) into Q, fuse KV, reshape W_o, bf16."""
    bf16 = jnp.bfloat16
    prepared = {
        'token_embedding': params['token_embedding'],
        'position_embedding': params['position_embedding'],
        'layers': [],
    }
    for layer in params['layers']:
        D = layer['wq'].shape[0]
        d_k = D // num_heads
        scale = 1.0 / math.sqrt(d_k)
        prepared['layers'].append({
            'wq': (layer['wq'] * scale).astype(bf16),                 # (D, D)
            'bq': (layer['bq'] * scale).astype(jnp.float32),          # (1, D)
            'w_kv': jnp.concatenate([layer['wk'], layer['wv']],
                                    axis=1).astype(bf16),             # (D, 2D)
            'b_kv': jnp.concatenate([layer['bk'], layer['bv']],
                                    axis=1).astype(jnp.float32),      # (1, 2D)
            'wo_r': layer['wo'].reshape(num_heads, d_k, D).astype(bf16),
            'bo': layer['bo'],
            'g1': layer['g1'], 'be1': layer['be1'],
            'w1': layer['w1'].astype(bf16), 'b1': layer['b1'],
            'w2': layer['w2'].astype(bf16), 'b2': layer['b2'],
            'g2': layer['g2'], 'be2': layer['be2'],
        })
    return prepared


# ----------------------------------------------------------------------------
# Full BERTEncoder forward.
# ----------------------------------------------------------------------------
def bert_encoder_forward(prepared, tokens, num_heads, d_model):
    B, S = tokens.shape
    tok_emb = jnp.take(prepared['token_embedding'], tokens, axis=0)      # (B,S,D)
    pos_emb = jnp.take(prepared['position_embedding'], jnp.arange(S), axis=0)
    # Matches the reference: x = dropout((tok + pos) * sqrt(d_model)); dropout
    # is identity in eval mode.  Inter-layer activations travel as bf16.
    x = ((tok_emb + pos_emb[None, :, :]) * math.sqrt(d_model)).astype(jnp.bfloat16)
    for lp in prepared['layers']:
        k, v = kv_projection(x, lp['w_kv'], lp['b_kv'], num_heads)
        x = encoder_layer(x, k, v, lp, num_heads)
    return x.astype(jnp.float32)


# ----------------------------------------------------------------------------
if __name__ == "__main__":
    vocab_size = 50
    d_model = 32
    num_heads = 4
    d_ff = 64
    num_layers = 2
    max_seq_len = 16
    batch = 2
    seq_len = 8

    key = jax.random.PRNGKey(0)
    pkey, tkey = jax.random.split(key)
    params = init_params(pkey, vocab_size, d_model, num_heads, d_ff,
                         num_layers, max_seq_len)
    tokens = jax.random.randint(tkey, (batch, seq_len), 0, vocab_size,
                                dtype=jnp.int32)

    prepared = prepare_params(params, num_heads)     # weight fusion, done once
    fwd = jax.jit(functools.partial(bert_encoder_forward,
                                    num_heads=num_heads, d_model=d_model))
    out = jax.block_until_ready(fwd(prepared, tokens))

    assert out.shape == (batch, seq_len, d_model)
    assert out.dtype == jnp.float32
    assert bool(jnp.all(jnp.isfinite(out)))
    print("KERNEL_OK")
</pallas_src>

<mosaic_0001>
module attributes {stable_mosaic.version = 11 : i64} {
  func.func @kv_projection_kernel(%arg0: i32, %arg1: memref<1x8x32xbf16, #tpu.memory_space<vmem>>, %arg2: memref<32x64xbf16, #tpu.memory_space<vmem>>, %arg3: memref<1x64xf32, #tpu.memory_space<vmem>>, %arg4: memref<1x4x8x8xbf16, #tpu.memory_space<vmem>>, %arg5: memref<1x4x8x8xbf16, #tpu.memory_space<vmem>>) attributes {dimension_semantics = [#tpu.dimension_semantics<parallel>], iteration_bounds = array<i64: 2>, scalar_prefetch = 0 : i64, scratch_operands = 0 : i64, tpu.core_type = #tpu.core_type<tc>, window_params = [{transform_indices = @transform_0, window_bounds = array<i64: 1, 8, 32>}, {pipeline_mode = #tpu.pipeline_mode<synchronous>, transform_indices = @transform_1, window_bounds = array<i64: 32, 64>}, {pipeline_mode = #tpu.pipeline_mode<synchronous>, transform_indices = @transform_2, window_bounds = array<i64: 1, 64>}, {transform_indices = @transform_3, window_bounds = array<i64: 1, 4, 8, 8>}, {transform_indices = @transform_4, window_bounds = array<i64: 1, 4, 8, 8>}]} {
    %c0 = arith.constant 0 : index
    %c0_0 = arith.constant 0 : index
    %c0_1 = arith.constant 0 : index
    %0 = vector.load %arg1[%c0, %c0_0, %c0_1] : memref<1x8x32xbf16, #tpu.memory_space<vmem>>, vector<1x8x32xbf16>
    %1 = vector.shape_cast %0 : vector<1x8x32xbf16> to vector<8x32xbf16>
    %c0_2 = arith.constant 0 : index
    %c0_3 = arith.constant 0 : index
    %2 = vector.load %arg2[%c0_2, %c0_3] : memref<32x64xbf16, #tpu.memory_space<vmem>>, vector<32x64xbf16>
    %cst = arith.constant dense<0.000000e+00> : vector<8x64xf32>
    %3 = tpu.matmul %1, %2, %cst {dimension_numbers = #tpu.dot_dimension_numbers<[1], [0], [0], [1], [0, 0, 1, 1], [], []>} : vector<8x32xbf16>, vector<32x64xbf16>, vector<8x64xf32> -> vector<8x64xf32>
    %c0_4 = arith.constant 0 : index
    %c0_5 = arith.constant 0 : index
    %4 = vector.load %arg3[%c0_4, %c0_5] : memref<1x64xf32, #tpu.memory_space<vmem>>, vector<1x64xf32>
    %5 = vector.broadcast %4 : vector<1x64xf32> to vector<8x64xf32>
    %6 = arith.addf %3, %5 : vector<8x64xf32>
    %7 = arith.truncf %6 : vector<8x64xf32> to vector<8x64xbf16>
    %8 = vector.extract_strided_slice %7 {offsets = [0, 0], sizes = [8, 8], strides = [1, 1]} : vector<8x64xbf16> to vector<8x8xbf16>
    %9 = vector.extract_strided_slice %7 {offsets = [0, 8], sizes = [8, 8], strides = [1, 1]} : vector<8x64xbf16> to vector<8x8xbf16>
    %10 = vector.extract_strided_slice %7 {offsets = [0, 16], sizes = [8, 8], strides = [1, 1]} : vector<8x64xbf16> to vector<8x8xbf16>
    %11 = vector.extract_strided_slice %7 {offsets = [0, 24], sizes = [8, 8], strides = [1, 1]} : vector<8x64xbf16> to vector<8x8xbf16>
    %12 = vector.shape_cast %8 : vector<8x8xbf16> to vector<1x8x8xbf16>
    %13 = vector.shape_cast %9 : vector<8x8xbf16> to vector<1x8x8xbf16>
    %14 = vector.shape_cast %10 : vector<8x8xbf16> to vector<1x8x8xbf16>
    %15 = vector.shape_cast %11 : vector<8x8xbf16> to vector<1x8x8xbf16>
    %16 = tpu.concatenate %12, %13, %14, %15 in 0 : vector<1x8x8xbf16>, vector<1x8x8xbf16>, vector<1x8x8xbf16>, vector<1x8x8xbf16> -> vector<4x8x8xbf16>
    %c0_6 = arith.constant 0 : index
    %c0_7 = arith.constant 0 : index
    %c0_8 = arith.constant 0 : index
    %c0_9 = arith.constant 0 : index
    %17 = vector.load %arg4[%c0_6, %c0_7, %c0_8, %c0_9] : memref<1x4x8x8xbf16, #tpu.memory_space<vmem>>, vector<1x4x8x8xbf16>
    %18 = vector.shape_cast %17 : vector<1x4x8x8xbf16> to vector<4x8x8xbf16>
    %19 = vector.shape_cast %16 : vector<4x8x8xbf16> to vector<1x4x8x8xbf16>
    tpu.vector_store %arg4[%c0_6, %c0_7, %c0_8, %c0_9], %19 {strides = array<i32>} : memref<1x4x8x8xbf16, #tpu.memory_space<vmem>>, vector<1x4x8x8xbf16>,
    %20 = vector.extract_strided_slice %7 {offsets = [0, 32], sizes = [8, 8], strides = [1, 1]} : vector<8x64xbf16> to vector<8x8xbf16>
    %21 = vector.extract_strided_slice %7 {offsets = [0, 40], sizes = [8, 8], strides = [1, 1]} : vector<8x64xbf16> to vector<8x8xbf16>
    %22 = vector.extract_strided_slice %7 {offsets = [0, 48], sizes = [8, 8], strides = [1, 1]} : vector<8x64xbf16> to vector<8x8xbf16>
    %23 = vector.extract_strided_slice %7 {offsets = [0, 56], sizes = [8, 8], strides = [1, 1]} : vector<8x64xbf16> to vector<8x8xbf16>
    %24 = vector.shape_cast %20 : vector<8x8xbf16> to vector<1x8x8xbf16>
    %25 = vector.shape_cast %21 : vector<8x8xbf16> to vector<1x8x8xbf16>
    %26 = vector.shape_cast %22 : vector<8x8xbf16> to vector<1x8x8xbf16>
    %27 = vector.shape_cast %23 : vector<8x8xbf16> to vector<1x8x8xbf16>
    %28 = tpu.concatenate %24, %25, %26, %27 in 0 : vector<1x8x8xbf16>, vector<1x8x8xbf16>, vector<1x8x8xbf16>, vector<1x8x8xbf16> -> vector<4x8x8xbf16>
    %c0_10 = arith.constant 0 : index
    %c0_11 = arith.constant 0 : index
    %c0_12 = arith.constant 0 : index
    %c0_13 = arith.constant 0 : index
    %29 = vector.load %arg5[%c0_10, %c0_11, %c0_12, %c0_13] : memref<1x4x8x8xbf16, #tpu.memory_space<vmem>>, vector<1x4x8x8xbf16>
    %30 = vector.shape_cast %29 : vector<1x4x8x8xbf16> to vector<4x8x8xbf16>
    %31 = vector.shape_cast %28 : vector<4x8x8xbf16> to vector<1x4x8x8xbf16>
    tpu.vector_store %arg5[%c0_10, %c0_11, %c0_12, %c0_13], %31 {strides = array<i32>} : memref<1x4x8x8xbf16, #tpu.memory_space<vmem>>, vector<1x4x8x8xbf16>,
    return
  }
  func.func @transform_0(%arg0: i32) -> (i32, i32, i32) {
    %c0_i32 = arith.constant 0 : i32
    %c0_i32_0 = arith.constant 0 : i32
    %c0_i32_1 = arith.constant 0 : i32
    return %arg0, %c0_i32, %c0_i32_0 : i32, i32, i32
  }
  func.func @transform_1(%arg0: i32) -> (i32, i32) {
    %c0_i32 = arith.constant 0 : i32
    %c0_i32_0 = arith.constant 0 : i32
    %c0_i32_1 = arith.constant 0 : i32
    return %c0_i32, %c0_i32_0 : i32, i32
  }
  func.func @transform_2(%arg0: i32) -> (i32, i32) {
    %c0_i32 = arith.constant 0 : i32
    %c0_i32_0 = arith.constant 0 : i32
    %c0_i32_1 = arith.constant 0 : i32
    return %c0_i32, %c0_i32_0 : i32, i32
  }
  func.func @transform_3(%arg0: i32) -> (i32, i32, i32, i32) {
    %c0_i32 = arith.constant 0 : i32
    %c0_i32_0 = arith.constant 0 : i32
    %c0_i32_1 = arith.constant 0 : i32
    %c0_i32_2 = arith.constant 0 : i32
    return %arg0, %c0_i32, %c0_i32_0, %c0_i32_1 : i32, i32, i32, i32
  }
  func.func @transform_4(%arg0: i32) -> (i32, i32, i32, i32) {
    %c0_i32 = arith.constant 0 : i32
    %c0_i32_0 = arith.constant 0 : i32
    %c0_i32_1 = arith.constant 0 : i32
    %c0_i32_2 = arith.constant 0 : i32
    return %arg0, %c0_i32, %c0_i32_0, %c0_i32_1 : i32, i32, i32, i32
  }
}

module attributes {stable_mosaic.version = 11 : i64} {
  func.func @encoder_layer_kernel(%arg0: i32, %arg1: i32, %arg2: memref<1x8x32xbf16, #tpu.memory_space<vmem>>, %arg3: memref<1x4x8x8xbf16, #tpu.memory_space<vmem>>, %arg4: memref<1x4x8x8xbf16, #tpu.memory_space<vmem>>, %arg5: memref<32x32xbf16, #tpu.memory_space<vmem>>, %arg6: memref<1x32xf32, #tpu.memory_space<vmem>>, %arg7: memref<4x8x32xbf16, #tpu.memory_space<vmem>>, %arg8: memref<1x32xf32, #tpu.memory_space<vmem>>, %arg9: memref<1x32xf32, #tpu.memory_space<vmem>>, %arg10: memref<1x32xf32, #tpu.memory_space<vmem>>, %arg11: memref<32x64xbf16, #tpu.memory_space<vmem>>, %arg12: memref<1x64xf32, #tpu.memory_space<vmem>>, %arg13: memref<64x32xbf16, #tpu.memory_space<vmem>>, %arg14: memref<1x32xf32, #tpu.memory_space<vmem>>, %arg15: memref<1x32xf32, #tpu.memory_space<vmem>>, %arg16: memref<1x32xf32, #tpu.memory_space<vmem>>, %arg17: memref<1x8x32xbf16, #tpu.memory_space<vmem>>) attributes {dimension_semantics = [#tpu.dimension_semantics<parallel>, #tpu.dimension_semantics<parallel>], iteration_bounds = array<i64: 2, 1>, scalar_prefetch = 0 : i64, scratch_operands = 0 : i64, tpu.core_type = #tpu.core_type<tc>, window_params = [{transform_indices = @transform_0, window_bounds = array<i64: 1, 8, 32>}, {transform_indices = @transform_1, window_bounds = array<i64: 1, 4, 8, 8>}, {transform_indices = @transform_2, window_bounds = array<i64: 1, 4, 8, 8>}, {pipeline_mode = #tpu.pipeline_mode<synchronous>, transform_indices = @transform_3, window_bounds = array<i64: 32, 32>}, {pipeline_mode = #tpu.pipeline_mode<synchronous>, transform_indices = @transform_4, window_bounds = array<i64: 1, 32>}, {pipeline_mode = #tpu.pipeline_mode<synchronous>, transform_indices = @transform_5, window_bounds = array<i64: 4, 8, 32>}, {pipeline_mode = #tpu.pipeline_mode<synchronous>, transform_indices = @transform_6, window_bounds = array<i64: 1, 32>}, {pipeline_mode = #tpu.pipeline_mode<synchronous>, transform_indices = @transform_7, window_bounds = array<i64: 1, 32>}, {pipeline_mode = #tpu.pipeline_mode<synchronous>, transform_indices = @transform_8, window_bounds = array<i64: 1, 32>}, {pipeline_mode = #tpu.pipeline_mode<synchronous>, transform_indices = @transform_9, window_bounds = array<i64: 32, 64>}, {pipeline_mode = #tpu.pipeline_mode<synchronous>, transform_indices = @transform_10, window_bounds = array<i64: 1, 64>}, {pipeline_mode = #tpu.pipeline_mode<synchronous>, transform_indices = @transform_11, window_bounds = array<i64: 64, 32>}, {pipeline_mode = #tpu.pipeline_mode<synchronous>, transform_indices = @transform_12, window_bounds = array<i64: 1, 32>}, {pipeline_mode = #tpu.pipeline_mode<synchronous>, transform_indices = @transform_13, window_bounds = array<i64: 1, 32>}, {pipeline_mode = #tpu.pipeline_mode<synchronous>, transform_indices = @transform_14, window_bounds = array<i64: 1, 32>}, {transform_indices = @transform_15, window_bounds = array<i64: 1, 8, 32>}]} {
    %c0 = arith.constant 0 : index
    %c0_0 = arith.constant 0 : index
    %c0_1 = arith.constant 0 : index
    %0 = vector.load %arg2[%c0, %c0_0, %c0_1] : memref<1x8x32xbf16, #tpu.memory_space<vmem>>, vector<1x8x32xbf16>
    %1 = vector.shape_cast %0 : vector<1x8x32xbf16> to vector<8x32xbf16>
    %c0_2 = arith.constant 0 : index
    %c0_3 = arith.constant 0 : index
    %c0_4 = arith.constant 0 : index
    %c0_5 = arith.constant 0 : index
    %2 = vector.load %arg3[%c0_2, %c0_3, %c0_4, %c0_5] : memref<1x4x8x8xbf16, #tpu.memory_space<vmem>>, vector<1x4x8x8xbf16>
    %3 = vector.shape_cast %2 : vector<1x4x8x8xbf16> to vector<4x8x8xbf16>
    %c0_6 = arith.constant 0 : index
    %c0_7 = arith.constant 0 : index
    %c0_8 = arith.constant 0 : index
    %c0_9 = arith.constant 0 : index
    %4 = vector.load %arg4[%c0_6, %c0_7, %c0_8, %c0_9] : memref<1x4x8x8xbf16, #tpu.memory_space<vmem>>, vector<1x4x8x8xbf16>
    %5 = vector.shape_cast %4 : vector<1x4x8x8xbf16> to vector<4x8x8xbf16>
    %c0_10 = arith.constant 0 : index
    %c0_11 = arith.constant 0 : index
    %6 = vector.load %arg5[%c0_10, %c0_11] : memref<32x32xbf16, #tpu.memory_space<vmem>>, vector<32x32xbf16>
    %cst = arith.constant dense<0.000000e+00> : vector<8x32xf32>
    %7 = tpu.matmul %1, %6, %cst {dimension_numbers = #tpu.dot_dimension_numbers<[1], [0], [0], [1], [0, 0, 1, 1], [], []>} : vector<8x32xbf16>, vector<32x32xbf16>, vector<8x32xf32> -> vector<8x32xf32>
    %c0_12 = arith.constant 0 : index
    %c0_13 = arith.constant 0 : index
    %8 = vector.load %arg6[%c0_12, %c0_13] : memref<1x32xf32, #tpu.memory_space<vmem>>, vector<1x32xf32>
    %9 = vector.broadcast %8 : vector<1x32xf32> to vector<8x32xf32>
    %10 = arith.addf %7, %9 : vector<8x32xf32>
    %11 = arith.truncf %10 : vector<8x32xf32> to vector<8x32xbf16>
    %12 = vector.extract_strided_slice %11 {offsets = [0, 0], sizes = [8, 8], strides = [1, 1]} : vector<8x32xbf16> to vector<8x8xbf16>
    %13 = vector.extract_strided_slice %11 {offsets = [0, 8], sizes = [8, 8], strides = [1, 1]} : vector<8x32xbf16> to vector<8x8xbf16>
    %14 = vector.extract_strided_slice %11 {offsets = [0, 16], sizes = [8, 8], strides = [1, 1]} : vector<8x32xbf16> to vector<8x8xbf16>
    %15 = vector.extract_strided_slice %11 {offsets = [0, 24], sizes = [8, 8], strides = [1, 1]} : vector<8x32xbf16> to vector<8x8xbf16>
    %16 = vector.shape_cast %12 : vector<8x8xbf16> to vector<1x8x8xbf16>
    %17 = vector.shape_cast %13 : vector<8x8xbf16> to vector<1x8x8xbf16>
    %18 = vector.shape_cast %14 : vector<8x8xbf16> to vector<1x8x8xbf16>
    %19 = vector.shape_cast %15 : vector<8x8xbf16> to vector<1x8x8xbf16>
    %20 = tpu.concatenate %16, %17, %18, %19 in 0 : vector<1x8x8xbf16>, vector<1x8x8xbf16>, vector<1x8x8xbf16>, vector<1x8x8xbf16> -> vector<4x8x8xbf16>
    "tpu.trace_start"() <{level = 10 : i32, message = "hqd,hkd->hqk"}> : () -> ()
    %cst_14 = arith.constant dense<0.000000e+00> : vector<4x8x8xf32>
    %21 = tpu.matmul %20, %3, %cst_14 {dimension_numbers = #tpu.dot_dimension_numbers<[2], [2], [1], [1], [0, 0, 0, 1, 1, 1], [0], [0]>} : vector<4x8x8xbf16>, vector<4x8x8xbf16>, vector<4x8x8xf32> -> vector<4x8x8xf32>
    "tpu.trace_stop"() : () -> ()
    %cst_15 = arith.constant dense<0xFF800000> : vector<4x8xf32>
    %22 = vector.multi_reduction <maximumf>, %21, %cst_15 [2] : vector<4x8x8xf32> to vector<4x8xf32>
    %23 = vector.shape_cast %22 : vector<4x8xf32> to vector<4x8x1xf32>
    %24 = vector.broadcast %23 : vector<4x8x1xf32> to vector<4x8x8xf32>
    %25 = arith.subf %21, %24 : vector<4x8x8xf32>
    %26 = math.exp %25 : vector<4x8x8xf32>
    %cst_16 = arith.constant dense<0.000000e+00> : vector<4x8xf32>
    %27 = vector.multi_reduction <add>, %26, %cst_16 [2] : vector<4x8x8xf32> to vector<4x8xf32>
    %28 = vector.shape_cast %27 : vector<4x8xf32> to vector<4x8x1xf32>
    %29 = tpu.reciprocal %28 {approx = true} : vector<4x8x1xf32> -> vector<4x8x1xf32>
    %30 = vector.broadcast %29 : vector<4x8x1xf32> to vector<4x8x8xf32>
    %31 = arith.mulf %26, %30 : vector<4x8x8xf32>
    %32 = arith.truncf %31 : vector<4x8x8xf32> to vector<4x8x8xbf16>
    "tpu.trace_start"() <{level = 10 : i32, message = "hqk,hkd->hqd"}> : () -> ()
    %cst_17 = arith.constant dense<0.000000e+00> : vector<4x8x8xf32>
    %33 = tpu.matmul %32, %5, %cst_17 {dimension_numbers = #tpu.dot_dimension_numbers<[2], [1], [1], [2], [0, 0, 0, 1, 1, 2], [0], [0]>} : vector<4x8x8xbf16>, vector<4x8x8xbf16>, vector<4x8x8xf32> -> vector<4x8x8xf32>
    "tpu.trace_stop"() : () -> ()
    %34 = arith.truncf %33 : vector<4x8x8xf32> to vector<4x8x8xbf16>
    %c0_18 = arith.constant 0 : index
    %c0_19 = arith.constant 0 : index
    %c0_20 = arith.constant 0 : index
    %35 = vector.load %arg7[%c0_18, %c0_19, %c0_20] : memref<4x8x32xbf16, #tpu.memory_space<vmem>>, vector<4x8x32xbf16>
    "tpu.trace_start"() <{level = 10 : i32, message = "hqd,hde->hqe"}> : () -> ()
    %cst_21 = arith.constant dense<0.000000e+00> : vector<4x8x32xf32>
    %36 = tpu.matmul %34, %35, %cst_21 {dimension_numbers = #tpu.dot_dimension_numbers<[2], [1], [1], [2], [0, 0, 0, 1, 1, 2], [0], [0]>} : vector<4x8x8xbf16>, vector<4x8x32xbf16>, vector<4x8x32xf32> -> vector<4x8x32xf32>
    "tpu.trace_stop"() : () -> ()
    %cst_22 = arith.constant dense<0.000000e+00> : vector<8x32xf32>
    %37 = vector.multi_reduction <add>, %36, %cst_22 [0] : vector<4x8x32xf32> to vector<8x32xf32>
    %c0_23 = arith.constant 0 : index
    %c0_24 = arith.constant 0 : index
    %38 = vector.load %arg8[%c0_23, %c0_24] : memref<1x32xf32, #tpu.memory_space<vmem>>, vector<1x32xf32>
    %39 = vector.broadcast %38 : vector<1x32xf32> to vector<8x32xf32>
    %40 = arith.addf %37, %39 : vector<8x32xf32>
    %41 = arith.extf %1 : vector<8x32xbf16> to vector<8x32xf32>
    %42 = arith.addf %41, %40 : vector<8x32xf32>
    %cst_25 = arith.constant dense<0.000000e+00> : vector<8xf32>
    %43 = vector.multi_reduction <add>, %42, %cst_25 [1] : vector<8x32xf32> to vector<8xf32>
    %44 = vector.shape_cast %43 : vector<8xf32> to vector<8x1xf32>
    %cst_26 = arith.constant 3.200000e+01 : f32
    %45 = vector.broadcast %cst_26 : f32 to vector<8x1xf32>
    %46 = arith.divf %44, %45 : vector<8x1xf32>
    %47 = vector.broadcast %46 : vector<8x1xf32> to vector<8x32xf32>
    %48 = arith.subf %42, %47 : vector<8x32xf32>
    %49 = arith.mulf %48, %48 : vector<8x32xf32>
    %cst_27 = arith.constant dense<0.000000e+00> : vector<8xf32>
    %50 = vector.multi_reduction <add>, %49, %cst_27 [1] : vector<8x32xf32> to vector<8xf32>
    %51 = vector.shape_cast %50 : vector<8xf32> to vector<8x1xf32>
    %cst_28 = arith.constant 3.200000e+01 : f32
    %52 = vector.broadcast %cst_28 : f32 to vector<8x1xf32>
    %53 = arith.divf %51, %52 : vector<8x1xf32>
    %54 = vector.broadcast %46 : vector<8x1xf32> to vector<8x32xf32>
    %55 = arith.subf %42, %54 : vector<8x32xf32>
    %cst_29 = arith.constant 9.99999974E-6 : f32
    %56 = vector.broadcast %cst_29 : f32 to vector<8x1xf32>
    %57 = arith.addf %53, %56 : vector<8x1xf32>
    %58 = math.rsqrt %57 : vector<8x1xf32>
    %59 = vector.broadcast %58 : vector<8x1xf32> to vector<8x32xf32>
    %60 = arith.mulf %55, %59 : vector<8x32xf32>
    %c0_30 = arith.constant 0 : index
    %c0_31 = arith.constant 0 : index
    %61 = vector.load %arg9[%c0_30, %c0_31] : memref<1x32xf32, #tpu.memory_space<vmem>>, vector<1x32xf32>
    %62 = vector.broadcast %61 : vector<1x32xf32> to vector<8x32xf32>
    %63 = arith.mulf %60, %62 : vector<8x32xf32>
    %c0_32 = arith.constant 0 : index
    %c0_33 = arith.constant 0 : index
    %64 = vector.load %arg10[%c0_32, %c0_33] : memref<1x32xf32, #tpu.memory_space<vmem>>, vector<1x32xf32>
    %65 = vector.broadcast %64 : vector<1x32xf32> to vector<8x32xf32>
    %66 = arith.addf %63, %65 : vector<8x32xf32>
    %67 = arith.truncf %66 : vector<8x32xf32> to vector<8x32xbf16>
    %c0_34 = arith.constant 0 : index
    %c0_35 = arith.constant 0 : index
    %68 = vector.load %arg11[%c0_34, %c0_35] : memref<32x64xbf16, #tpu.memory_space<vmem>>, vector<32x64xbf16>
    %cst_36 = arith.constant dense<0.000000e+00> : vector<8x64xf32>
    %69 = tpu.matmul %67, %68, %cst_36 {dimension_numbers = #tpu.dot_dimension_numbers<[1], [0], [0], [1], [0, 0, 1, 1], [], []>} : vector<8x32xbf16>, vector<32x64xbf16>, vector<8x64xf32> -> vector<8x64xf32>
    %c0_37 = arith.constant 0 : index
    %c0_38 = arith.constant 0 : index
    %70 = vector.load %arg12[%c0_37, %c0_38] : memref<1x64xf32, #tpu.memory_space<vmem>>, vector<1x64xf32>
    %71 = vector.broadcast %70 : vector<1x64xf32> to vector<8x64xf32>
    %72 = arith.addf %69, %71 : vector<8x64xf32>
    %cst_39 = arith.constant 0.000000e+00 : f32
    %73 = vector.broadcast %cst_39 : f32 to vector<8x64xf32>
    %74 = arith.maximumf %72, %73 : vector<8x64xf32>
    %75 = arith.truncf %74 : vector<8x64xf32> to vector<8x64xbf16>
    %c0_40 = arith.constant 0 : index
    %c0_41 = arith.constant 0 : index
    %76 = vector.load %arg13[%c0_40, %c0_41] : memref<64x32xbf16, #tpu.memory_space<vmem>>, vector<64x32xbf16>
    %cst_42 = arith.constant dense<0.000000e+00> : vector<8x32xf32>
    %77 = tpu.matmul %75, %76, %cst_42 {dimension_numbers = #tpu.dot_dimension_numbers<[1], [0], [0], [1], [0, 0, 1, 1], [], []>} : vector<8x64xbf16>, vector<64x32xbf16>, vector<8x32xf32> -> vector<8x32xf32>
    %c0_43 = arith.constant 0 : index
    %c0_44 = arith.constant 0 : index
    %78 = vector.load %arg14[%c0_43, %c0_44] : memref<1x32xf32, #tpu.memory_space<vmem>>, vector<1x32xf32>
    %79 = vector.broadcast %78 : vector<1x32xf32> to vector<8x32xf32>
    %80 = arith.addf %77, %79 : vector<8x32xf32>
    %81 = arith.addf %66, %80 : vector<8x32xf32>
    %cst_45 = arith.constant dense<0.000000e+00> : vector<8xf32>
    %82 = vector.multi_reduction <add>, %81, %cst_45 [1] : vector<8x32xf32> to vector<8xf32>
    %83 = vector.shape_cast %82 : vector<8xf32> to vector<8x1xf32>
    %cst_46 = arith.constant 3.200000e+01 : f32
    %84 = vector.broadcast %cst_46 : f32 to vector<8x1xf32>
    %85 = arith.divf %83, %84 : vector<8x1xf32>
    %86 = vector.broadcast %85 : vector<8x1xf32> to vector<8x32xf32>
    %87 = arith.subf %81, %86 : vector<8x32xf32>
    %88 = arith.mulf %87, %87 : vector<8x32xf32>
    %cst_47 = arith.constant dense<0.000000e+00> : vector<8xf32>
    %89 = vector.multi_reduction <add>, %88, %cst_47 [1] : vector<8x32xf32> to vector<8xf32>
    %90 = vector.shape_cast %89 : vector<8xf32> to vector<8x1xf32>
    %cst_48 = arith.constant 3.200000e+01 : f32
    %91 = vector.broadcast %cst_48 : f32 to vector<8x1xf32>
    %92 = arith.divf %90, %91 : vector<8x1xf32>
    %93 = vector.broadcast %85 : vector<8x1xf32> to vector<8x32xf32>
    %94 = arith.subf %81, %93 : vector<8x32xf32>
    %cst_49 = arith.constant 9.99999974E-6 : f32
    %95 = vector.broadcast %cst_49 : f32 to vector<8x1xf32>
    %96 = arith.addf %92, %95 : vector<8x1xf32>
    %97 = math.rsqrt %96 : vector<8x1xf32>
    %98 = vector.broadcast %97 : vector<8x1xf32> to vector<8x32xf32>
    %99 = arith.mulf %94, %98 : vector<8x32xf32>
    %c0_50 = arith.constant 0 : index
    %c0_51 = arith.constant 0 : index
    %100 = vector.load %arg15[%c0_50, %c0_51] : memref<1x32xf32, #tpu.memory_space<vmem>>, vector<1x32xf32>
    %101 = vector.broadcast %100 : vector<1x32xf32> to vector<8x32xf32>
    %102 = arith.mulf %99, %101 : vector<8x32xf32>
    %c0_52 = arith.constant 0 : index
    %c0_53 = arith.constant 0 : index
    %103 = vector.load %arg16[%c0_52, %c0_53] : memref<1x32xf32, #tpu.memory_space<vmem>>, vector<1x32xf32>
    %104 = vector.broadcast %103 : vector<1x32xf32> to vector<8x32xf32>
    %105 = arith.addf %102, %104 : vector<8x32xf32>
    %106 = arith.truncf %105 : vector<8x32xf32> to vector<8x32xbf16>
    %c0_54 = arith.constant 0 : index
    %c0_55 = arith.constant 0 : index
    %c0_56 = arith.constant 0 : index
    %107 = vector.load %arg17[%c0_54, %c0_55, %c0_56] : memref<1x8x32xbf16, #tpu.memory_space<vmem>>, vector<1x8x32xbf16>
    %108 = vector.shape_cast %107 : vector<1x8x32xbf16> to vector<8x32xbf16>
    %109 = vector.shape_cast %106 : vector<8x32xbf16> to vector<1x8x32xbf16>
    tpu.vector_store %arg17[%c0_54, %c0_55, %c0_56], %109 {strides = array<i32>} : memref<1x8x32xbf16, #tpu.memory_space<vmem>>, vector<1x8x32xbf16>,
    return
  }
  func.func @transform_0(%arg0: i32, %arg1: i32) -> (i32, i32, i32) {
    %c0_i32 = arith.constant 0 : i32
    %c0_i32_0 = arith.constant 0 : i32
    return %arg0, %arg1, %c0_i32 : i32, i32, i32
  }
  func.func @transform_1(%arg0: i32, %arg1: i32) -> (i32, i32, i32, i32) {
    %c0_i32 = arith.constant 0 : i32
    %c0_i32_0 = arith.constant 0 : i32
    %c0_i32_1 = arith.constant 0 : i32
    %c0_i32_2 = arith.constant 0 : i32
    return %arg0, %c0_i32, %c0_i32_0, %c0_i32_1 : i32, i32, i32, i32
  }
  func.func @transform_2(%arg0: i32, %arg1: i32) -> (i32, i32, i32, i32) {
    %c0_i32 = arith.constant 0 : i32
    %c0_i32_0 = arith.constant 0 : i32
    %c0_i32_1 = arith.constant 0 : i32
    %c0_i32_2 = arith.constant 0 : i32
    return %arg0, %c0_i32, %c0_i32_0, %c0_i32_1 : i32, i32, i32, i32
  }
  func.func @transform_3(%arg0: i32, %arg1: i32) -> (i32, i32) {
    %c0_i32 = arith.constant 0 : i32
    %c0_i32_0 = arith.constant 0 : i32
    %c0_i32_1 = arith.constant 0 : i32
    return %c0_i32, %c0_i32_0 : i32, i32
  }
  func.func @transform_4(%arg0: i32, %arg1: i32) -> (i32, i32) {
    %c0_i32 = arith.constant 0 : i32
    %c0_i32_0 = arith.constant 0 : i32
    %c0_i32_1 = arith.constant 0 : i32
    return %c0_i32, %c0_i32_0 : i32, i32
  }
  func.func @transform_5(%arg0: i32, %arg1: i32) -> (i32, i32, i32) {
    %c0_i32 = arith.constant 0 : i32
    %c0_i32_0 = arith.constant 0 : i32
    %c0_i32_1 = arith.constant 0 : i32
    %c0_i32_2 = arith.constant 0 : i32
    return %c0_i32, %c0_i32_0, %c0_i32_1 : i32, i32, i32
  }
  func.func @transform_6(%arg0: i32, %arg1: i32) -> (i32, i32) {
    %c0_i32 = arith.constant 0 : i32
    %c0_i32_0 = arith.constant 0 : i32
    %c0_i32_1 = arith.constant 0 : i32
    return %c0_i32, %c0_i32_0 : i32, i32
  }
  func.func @transform_7(%arg0: i32, %arg1: i32) -> (i32, i32) {
    %c0_i32 = arith.constant 0 : i32
    %c0_i32_0 = arith.constant 0 : i32
    %c0_i32_1 = arith.constant 0 : i32
    return %c0_i32, %c0_i32_0 : i32, i32
  }
  func.func @transform_8(%arg0: i32, %arg1: i32) -> (i32, i32) {
    %c0_i32 = arith.constant 0 : i32
    %c0_i32_0 = arith.constant 0 : i32
    %c0_i32_1 = arith.constant 0 : i32
    return %c0_i32, %c0_i32_0 : i32, i32
  }
  func.func @transform_9(%arg0: i32, %arg1: i32) -> (i32, i32) {
    %c0_i32 = arith.constant 0 : i32
    %c0_i32_0 = arith.constant 0 : i32
    %c0_i32_1 = arith.constant 0 : i32
    return %c0_i32, %c0_i32_0 : i32, i32
  }
  func.func @transform_10(%arg0: i32, %arg1: i32) -> (i32, i32) {
    %c0_i32 = arith.constant 0 : i32
    %c0_i32_0 = arith.constant 0 : i32
    %c0_i32_1 = arith.constant 0 : i32
    return %c0_i32, %c0_i32_0 : i32, i32
  }
  func.func @transform_11(%arg0: i32, %arg1: i32) -> (i32, i32) {
    %c0_i32 = arith.constant 0 : i32
    %c0_i32_0 = arith.constant 0 : i32
    %c0_i32_1 = arith.constant 0 : i32
    return %c0_i32, %c0_i32_0 : i32, i32
  }
  func.func @transform_12(%arg0: i32, %arg1: i32) -> (i32, i32) {
    %c0_i32 = arith.constant 0 : i32
    %c0_i32_0 = arith.constant 0 : i32
    %c0_i32_1 = arith.constant 0 : i32
    return %c0_i32, %c0_i32_0 : i32, i32
  }
  func.func @transform_13(%arg0: i32, %arg1: i32) -> (i32, i32) {
    %c0_i32 = arith.constant 0 : i32
    %c0_i32_0 = arith.constant 0 : i32
    %c0_i32_1 = arith.constant 0 : i32
    return %c0_i32, %c0_i32_0 : i32, i32
  }
  func.func @transform_14(%arg0: i32, %arg1: i32) -> (i32, i32) {
    %c0_i32 = arith.constant 0 : i32
    %c0_i32_0 = arith.constant 0 : i32
    %c0_i32_1 = arith.constant 0 : i32
    return %c0_i32, %c0_i32_0 : i32, i32
  }
  func.func @transform_15(%arg0: i32, %arg1: i32) -> (i32, i32, i32) {
    %c0_i32 = arith.constant 0 : i32
    %c0_i32_0 = arith.constant 0 : i32
    return %arg0, %arg1, %c0_i32 : i32, i32, i32
  }
}

</mosaic_0001>

<bundles_post_ra>
// kernel: bert_encoder_forward.4
= control target key start
LH: loop header
LB: loop body
LE: loop exit
PB: predicated region body
PF: predicated region fallthrough
CT: control target
= control target key end

     0   :  { %s494_s15 = smov 0   ;;  %s535_s0 = inlined_call_operand.vmem [shape: bf16[2,8,32], index: 0, kind: input, shape index: {}]   ;;  %s536_s1 = inlined_call_operand.vmem [shape: bf16[32,64], index: 1, kind: input, shape index: {}]   ;;  %s537_s2 = inlined_call_operand.vmem [shape: f32[1,64], index: 2, kind: input, shape index: {}]   ;;  %s538_s3 = inlined_call_operand.vmem [shape: bf16[2,4,8,8], index: 3, kind: output, shape index: {0}]   ;;  %s539_s4 = inlined_call_operand.vmem [shape: bf16[2,4,8,8], index: 4, kind: output, shape index: {1}]  }
   0x1 LB: > { %s405_s16 = sadd.s32 4294967295, %s461_s15   ;;  %p409_p0 = scmp.ge.s32.totalorder %s461_s15, 1  ;;  %s461_s15 = sphi %s494_s15, %s15_s15  }
   0x2   : > { %p164_p1 = scmp.lt.s32.totalorder %s461_s15, 3 }
   0x4   : > { %p165_p2 = pnand %p409_p0, %p164_p1 }
   0x5   : > { %v453_v0 = vld [vmem:[%s536_s1] sm:$0xff] (!%p165_p2)   ;;  %v463_v1 = vmov (!%p165_p2), 0.0   ;;  %v454_v2 = vld [vmem:[%s536_s1 + $0x8] sm:$0xff] (!%p165_p2)   ;;  %vm464_vm0 = vmmov (!%p165_p2), 0   ;;  %p194_p3 = scmp.lt.s32.totalorder (!%p165_p2), %s405_s16, 1  ;;  %vm233_vm1 = vcmask (!%p165_p2), 261120  }
   0x6   : > { %168 = sbr.rel (%p165_p2) target bundleno = 470 (0x1d6), region = 32  ;;  %431 = vmatprep.subr.bf16.mxu0 (!%p165_p2), %v463_v1  ;;  %435 = vmatprep.mubr.msk.bf16.mxu0 (!%p165_p2), %vm464_vm0, %v463_v1  ;;  %v415_v4 = vld [vmem:[%s537_s2] ss:$0 sm:$0xff] (!%p165_p2)  ;;  %vm288_vm2 = vcmask (!%p165_p2), 60416   ;;  %s465_s5 = smov (!%p165_p2), 104  }
   0x7   : > { %432 = vmatpush3.bf16.msra.mxu0 (!%p165_p2), %v453_v0  ;;  %s466_s6 = smov (!%p165_p2), 120   ;;  %s467_s7 = smov (!%p165_p2), 96  }
   0x8   : > { %433 = vmatprep.subr.bf16.mxu0 (!%p165_p2), %v463_v1  ;;  %s468_s8 = smov (!%p165_p2), 112  }
   0xb   : > { %434 = vmatpush3.bf16.msra.mxu0 (!%p165_p2), %v454_v2 }
   0xd   : > { %s541_s16 = smov (!%p194_p3, %s405_s16), 1 }
   0xe   : > { %s410_s21 = sshll.u32 %s541_s16, 2  ;;  %s425_s27 = sshll.u32 %s541_s16, 4 }
   0xf   : > { %s197_s24 = scalar_lea.vmem %s535_s0, %s410_s21  ;;  %s202_s30 = scalar_lea.vmem %s538_s3, %s425_s27 }
  0x10   : > { %v209_v3 = vld [vmem:[%s197_s24] sm:$0xf]  ;;  %s207_s11 = scalar_lea.vmem %s539_s4, %s425_s27 }
  0x11   : > { %436 = vmatmul.mubr.msk.bf16.vlgmr.msra.gmra.mrb[0].mxu0 %vm233_vm1, %v209_v3 }
  0xe4   : > { %v271_v5 = vpop.f32.mrb[0].mxu0 }
  0xe5   : > { %v272_v6 = vadd.f32 %v415_v4, %v271_v5  ;;  %v437_v7 = vpop.f32.mrb[1].mxu0 }
  0xe6   : > { %v274_v8 = vpop.f32.mrb[2].mxu0 }
  0xe7   : > { %v277_v9 = vpack.c.bf16 %v272_v6, %v272_v6  ;;  %v438_v10 = vpop.f32.mrb[3].mxu0 }
  0xe9   : > { %285 = vrot.lane.b32.xlu1 %v277_v9, %s465_s5  ;;  %279 = vrot.lane.b32.xlu0 %v277_v9, %s466_s6  ;;  %289 = vst.msk [vmem:[%s202_s30] sm:$0xf] %vm288_vm2, %v277_v9 }
  0xed   : > { %301 = vrot.lane.b32.xlu1 %v277_v9, %s467_s7  ;;  %282 = vrot.lane.b32.xlu0 %v277_v9, %s468_s8 }
 0x15b   : > { %v286_v11 = vpop.permute.xlu1 %285  ;;  %v280_v12 = vpop.permute.xlu0 %279 }
 0x15c   : > { %292 = vst.msk [vmem:[%s202_s30 + $0xc] sm:$0xf] %vm288_vm2, %v286_v11  ;;  %290 = vst.msk [vmem:[%s202_s30 + $0x4] sm:$0xf] %vm288_vm2, %v280_v12  ;;  %v420_v13 = vcombine.low %v280_v12, %v280_v12  ;;  %v422_v16 = vcombine.low %v286_v11, %v286_v11 }
 0x15e   : > { %303 = vrot.lane.b32.xlu0 %v420_v13, %s467_s7 }
 0x15f   : > { %v302_v14 = vpop.permute.xlu1 %301  ;;  %v283_v15 = vpop.permute.xlu0 %282 }
 0x160   : > { %313 = vst.msk [vmem:[%s207_s11] sm:$0xf] %vm288_vm2, %v302_v14  ;;  %291 = vst.msk [vmem:[%s202_s30 + $0x8] sm:$0xf] %vm288_vm2, %v283_v15  ;;  %v421_v17 = vcombine.low %v283_v15, %v283_v15 }
 0x162   : > { %307 = vrot.lane.b32.xlu0 %v422_v16, %s467_s7  ;;  %305 = vrot.lane.b32.xlu1 %v421_v17, %s467_s7 }
 0x1d0   : > { %v304_v18 = vpop.permute.xlu0 %303 }
 0x1d1   : > { %314 = vst.msk [vmem:[%s207_s11 + $0x4] sm:$0xf] %vm288_vm2, %v304_v18 }
 0x1d4   : > { %v306_v19 = vpop.permute.xlu1 %305  ;;  %v308_v20 = vpop.permute.xlu0 %307 }
 0x1d5   : > { %315 = vst.msk [vmem:[%s207_s11 + $0x8] sm:$0xf] %vm288_vm2, %v306_v19  ;;  %316 = vst.msk [vmem:[%s207_s11 + $0xc] sm:$0xf] %vm288_vm2, %v308_v20 }
 0x1d6 PF: > { %s15_s15 = sadd.s32 1, %s461_s15  }
 0x1d7   : > { %p12_p4 = scmp.ge.s32.totalorder %s15_s15, 4  }
 0x1d9   :  { %14 = sbr.rel (!%p12_p4) target bundleno = 1 (0x1), region = 74 }

// kernel: bert_encoder_forward.5
= control target key start
LH: loop header
LB: loop body
LE: loop exit
PB: predicated region body
PF: predicated region fallthrough
CT: control target
= control target key end

     0   :  { %s1933_s18 = smov 0   ;;  %s1935_s19 = smov 0   ;;  %s2152_s0 = inlined_call_operand.vmem [shape: bf16[2,8,32], index: 0, kind: input, shape index: {}]   ;;  %s2153_s1 = inlined_call_operand.vmem [shape: bf16[2,4,8,8], index: 1, kind: input, shape index: {}]   ;;  %s2154_s2 = inlined_call_operand.vmem [shape: bf16[2,4,8,8], index: 2, kind: input, shape index: {}]   ;;  %s2155_s3 = inlined_call_operand.vmem [shape: bf16[32,32], index: 3, kind: input, shape index: {}]   ;;  %s2156_s4 = inlined_call_operand.vmem [shape: f32[1,32], index: 4, kind: input, shape index: {}]   ;;  %s2157_s5 = inlined_call_operand.vmem [shape: bf16[4,8,32], index: 5, kind: input, shape index: {}]   ;;  %s2158_s6 = inlined_call_operand.vmem [shape: f32[1,32], index: 6, kind: input, shape index: {}]   ;;  %s2159_s7 = inlined_call_operand.vmem [shape: f32[1,32], index: 7, kind: input, shape index: {}]   ;;  %s2160_s8 = inlined_call_operand.vmem [shape: f32[1,32], index: 8, kind: input, shape index: {}]   ;;  %s2161_s9 = inlined_call_operand.vmem [shape: bf16[32,64], index: 9, kind: input, shape index: {}]   ;;  %s2162_s10 = inlined_call_operand.vmem [shape: f32[1,64], index: 10, kind: input, shape index: {}]   ;;  %s2163_s11 = inlined_call_operand.vmem [shape: bf16[64,32], index: 11, kind: input, shape index: {}]   ;;  %s2164_s12 = inlined_call_operand.vmem [shape: f32[1,32], index: 12, kind: input, shape index: {}]   ;;  %s2165_s13 = inlined_call_operand.vmem [shape: f32[1,32], index: 13, kind: input, shape index: {}]   ;;  %s2166_s14 = inlined_call_operand.vmem [shape: f32[1,32], index: 14, kind: input, shape index: {}]   ;;  %s2167_s15 = inlined_call_operand.vmem [shape: bf16[2,8,32], index: 15, kind: output, shape index: {}]  }
   0x1   :  { %s1937_s20 = smov 0  }
   0x2 LB: > { %s37_s21 = sadd.s32 1, %s1842_s19  ;;  %p1590_p0 = scmp.ge.s32.totalorder %s1846_s20, 1  ;;  %s1846_s20 = sphi %s1937_s20, %s25_s20   ;;  %s1842_s19 = sphi %s1935_s19, %s2169_s19   ;;  %s1838_s18 = sphi %s1933_s18, %s2168_s18  }
   0x3   : > { %p39_p1 = scmp.ge.s32.totalorder %s37_s21, 2  ;;  %p475_p2 = scmp.lt.s32.totalorder %s1846_s20, 3 }
   0x5   : > { %s2171_s21 = smov (%p39_p1, %s37_s21), 0  ;;  %p476_p3 = pnand %p1590_p0, %p475_p2 }
   0x6   : > { %v1796_v0 = vld [vmem:[%s2155_s3] sm:$0xff] (!%p476_p3)   ;;  %v1848_v1 = vmov (!%p476_p3), 0.0   ;;  %v1797_v2 = vld [vmem:[%s2155_s3 + $0x8] sm:$0xff] (!%p476_p3)   ;;  %vm1849_vm0 = vmmov (!%p476_p3), 0   ;;  %p537_p4 = scmp.lt.s32.totalorder (!%p476_p3), %s1838_s18, 1  ;;  %vm594_vm1 = vcmask (!%p476_p3), 261120  }
   0x7   : > { %479 = sbr.rel (%p476_p3) target bundleno = 2383 (0x94f), region = 80  ;;  %1667 = vmatprep.subr.bf16.mxu1 (!%p476_p3), %v1848_v1  ;;  %1681 = vmatprep.subr.bf16.mxu0 (!%p476_p3), %v1848_v1  ;;  %vm646_vm2 = vcmask (!%p476_p3), 64512   ;;  %v1597_v8 = vld [vmem:[%s2156_s4] ss:$0 sm:$0xff] (!%p476_p3)  ;;  %s1850_s25 = smov (!%p476_p3), 104   ;;  %vm882_vm3 = vcmask (!%p476_p3), 1043456  }
   0x8   : > { %1668 = vmatpush3.bf16.msra.mxu1 (!%p476_p3), %v1796_v0  ;;  %1671 = vmatprep.mubr.msk.bf16.mxu1 (!%p476_p3), %vm1849_vm0, %v1848_v1  ;;  %s1851_s28 = smov (!%p476_p3), 120   ;;  %s1852_s29 = smov (!%p476_p3), 112   ;;  %vm1411_vm4 = vcmask (!%p476_p3), 523264   ;;  %vm1486_vm5 = vcmask (!%p476_p3), 257024  }
   0x9   : > { %1669 = vmatprep.subr.bf16.mxu1 (!%p476_p3), %v1848_v1  ;;  %1683 = vmatprep.mubr.msk.bf16.mxu0 (!%p476_p3), %vm1849_vm0, %v1848_v1 }
   0xc   : > { %1670 = vmatpush3.bf16.msra.mxu1 (!%p476_p3), %v1797_v2 }
   0xd   : > { %1675 = vmatprep.subr.bf16.mxu1 (!%p476_p3), %v1848_v1 }
   0xe   : > { %s2173_s18 = smov (!%p537_p4, %s1838_s18), 1 }
   0xf   : > { %s1591_s26 = sshll.u32 %s2173_s18, 2  ;;  %s1630_s27 = sshll.u32 %s2173_s18, 4 }
  0x10   : > { %s543_s30 = scalar_lea.vmem %s2152_s0, %s1591_s26  ;;  %s1981_s22 = scalar_lea.vmem %s2153_s1, %s1630_s27 }
  0x11   : > { %v1974_v3 = vld [vmem:[%s543_s30] sm:$0xf]  ;;  %v564_v6 = vld [vmem:[%s1981_s22 + $0x4] sm:$0xf]  ;;  %v565_v12 = vld [vmem:[%s1981_s22 + $0x8] sm:$0xf]  ;;  %s2024_s17 = scalar_lea.vmem %s2154_s2, %s1630_s27 }
  0x12   : > { %1672 = vmatmul.mubr.msk.bf16.vlgmr.msra.gmra.mrb[0].mxu1 %vm594_vm1, %v1974_v3  ;;  %v563_v4 = vld [vmem:[%s1981_s22] sm:$0xf]  ;;  %v697_v7 = vsel %vm646_vm2, %v564_v6, 0  ;;  %v743_v16 = vsel %vm646_vm2, %v565_v12, 0  ;;  %v566_v17 = vld [vmem:[%s1981_s22 + $0xc] sm:$0xf] }
  0x13   : > { %1677 = vmatprep.mubr.msk.bf16.mxu1 %vm1849_vm0, %v1848_v1  ;;  %v651_v5 = vsel %vm646_vm2, %v563_v4, 0  ;;  %1682 = vmatpush3.bf16.xpose.msra.mxu0 %v697_v7  ;;  %v789_v18 = vsel %vm646_vm2, %v566_v17, 0  ;;  %v567_v47 = vld [vmem:[%s2024_s17] sm:$0xf]  ;;  %v568_v0 = vld [vmem:[%s2024_s17 + $0x4] sm:$0xf] }
  0x14   : > { %1693 = vmatprep.subr.bf16.mxu0 %v1848_v1  ;;  %v884_v48 = vsel %vm882_vm3, %v567_v47, 0  ;;  %v930_v2 = vsel %vm882_vm3, %v568_v0, 0  ;;  %v569_v6 = vld [vmem:[%s2024_s17 + $0x8] sm:$0xf] }
  0x15   : > { %1676 = vmatpush3.bf16.xpose.msra.mxu1 %v651_v5 }
  0x16   : > { %1687 = vmatprep.subr.bf16.mxu1 %v1848_v1 }
  0xe5   : > { %v632_v9 = vpop.f32.mrb[0].mxu1 }
  0xe6   : > { %v633_v10 = vadd.f32 %v1597_v8, %v632_v9  ;;  %v1673_v11 = vpop.f32.mrb[1].mxu1  ;;  %v976_v9 = vsel %vm882_vm3, %v569_v6, 0 }
  0xe7   : > { %v635_v13 = vpop.f32.mrb[2].mxu1 }
  0xe8   : > { %v638_v14 = vpack.c.bf16 %v633_v10, %v633_v10  ;;  %v1674_v15 = vpop.f32.mrb[3].mxu1 }
  0xea   : > { %644 = vrot.lane.b32.xlu1 %v638_v14, %s1850_s25  ;;  %640 = vrot.lane.b32.xlu0 %v638_v14, %s1851_s28 }
  0xeb   : > { %1678 = vmatmul.mubr.msk.bf16.vlgmr.msra.gmra.mrb[4].mxu1 %vm646_vm2, %v638_v14 }
  0xec   : > { %1688 = vmatpush3.bf16.xpose.msra.mxu1 %v743_v16  ;;  %1689 = vmatprep.mubr.msk.bf16.mxu1 %vm1849_vm0, %v1848_v1 }
  0xed   : > { %1699 = vmatprep.subr.bf16.mxu1 %v1848_v1 }
  0xee   : > { %642 = vrot.lane.b32.xlu0 %v638_v14, %s1852_s29  ;;  %v570_v14 = vld [vmem:[%s2024_s17 + $0xc] sm:$0xf]  ;;  %s560_s29 = scalar_lea.vmem %s2167_s15, %s1591_s26 }
  0xef   : > { %v1022_v17 = vsel %vm882_vm3, %v570_v14, 0 }
 0x15c   : > { %v641_v19 = vpop.permute.xlu0 %640  ;;  %v645_v21 = vpop.permute.xlu1 %644 }
 0x15d   : > { %1684 = vmatmul.mubr.msk.bf16.vlgmr.msra.gmra.mrb[0].mxu0 %vm646_vm2, %v641_v19  ;;  %v1068_v19 = vld [vmem:[%s2157_s5] sm:$0xf] }
 0x15e   : > { %1694 = vmatpush3.bf16.xpose.msra.mxu0 %v789_v18  ;;  %1695 = vmatprep.mubr.msk.bf16.mxu0 %vm1849_vm0, %v1848_v1 }
 0x15f   : > { %1705 = vmatprep.subr.bf16.mxu0 %v1848_v1 }
 0x160   : > { %v643_v20 = vpop.permute.xlu0 %642 }
 0x161   : > { %1690 = vmatmul.mubr.msk.bf16.vlgmr.msra.gmra.mrb[8].mxu1 %vm646_vm2, %v643_v20 }
 0x162   : > { %1701 = vmatprep.mubr.msk.bf16.mxu1 %vm1849_vm0, %v1848_v1  ;;  %1700 = vmatpush3.bf16.msra.mxu1 %v884_v48 }
 0x163   : > { %1711 = vmatprep.subr.bf16.mxu1 %v1848_v1 }
 0x165   : > { %1696 = vmatmul.mubr.msk.bf16.vlgmr.msra.gmra.mrb[4].mxu0 %vm646_vm2, %v645_v21 }
 0x166   : > { %1707 = vmatprep.mubr.msk.bf16.mxu0 %vm1849_vm0, %v1848_v1  ;;  %1706 = vmatpush3.bf16.msra.mxu0 %v930_v2 }
 0x167   : > { %1717 = vmatprep.subr.bf16.mxu0 %v1848_v1 }
 0x1be   : > { %v687_v22 = vpop.f32.mrb[4].mxu1 }
 0x1bf   : > { %v1679_v23 = vpop.f32.mrb[5].mxu1  ;;  %v831_v24 = vsel %vm646_vm2, %v687_v22, -inf }
 0x1c0   : > { %832 = vmax.xlane.f32.xlu1 %v831_v24  ;;  %v690_v25 = vpop.f32.mrb[6].mxu1  ;;  %v1069_v24 = vld [vmem:[%s2157_s5 + $0x4] sm:$0xf] }
 0x1c1   : > { %v1680_v26 = vpop.f32.mrb[7].mxu1 }
 0x230   : > { %v733_v27 = vpop.f32.mrb[0].mxu0 }
 0x231   : > { %v1685_v28 = vpop.f32.mrb[1].mxu0  ;;  %v834_v29 = vsel %vm646_vm2, %v733_v27, -inf }
 0x232   : > { %835 = vmax.xlane.f32.xlu0 %v834_v29  ;;  %v736_v30 = vpop.f32.mrb[2].mxu0  ;;  %v1070_v28 = vld [vmem:[%s2157_s5 + $0x8] sm:$0xf] }
 0x233   : > { %v1686_v31 = vpop.f32.mrb[3].mxu0 }
 0x234   : > { %v779_v32 = vpop.f32.mrb[8].mxu1 }
 0x235   : > { %v1691_v33 = vpop.f32.mrb[9].mxu1  ;;  %v837_v34 = vsel %vm646_vm2, %v779_v32, -inf }
 0x236   : > { %838 = vmax.xlane.f32.xlu0 %v837_v34  ;;  %v782_v35 = vpop.f32.mrb[10].mxu1 }
 0x237   : > { %v1692_v36 = vpop.f32.mrb[11].mxu1  ;;  %v1071_v35 = vld [vmem:[%s2157_s5 + $0xc] sm:$0xf] }
 0x238   : > { %v825_v37 = vpop.f32.mrb[4].mxu0 }
 0x239   : > { %v1697_v38 = vpop.f32.mrb[5].mxu0  ;;  %v840_v39 = vsel %vm646_vm2, %v825_v37, -inf }
 0x23a   : > { %v828_v40 = vpop.f32.mrb[6].mxu0  ;;  %841 = vmax.xlane.f32.xlu1 %v840_v39  ;;  %v1214_v39 = vsel %vm882_vm3, %v1071_v35, 0 }
 0x23b   : > { %v1698_v41 = vpop.f32.mrb[7].mxu0 }
 0x24d   : > { %v833_v42 = vpop.xlane.xlu1 %832 }
 0x24e   : > { %v843_v43 = vsub.f32 %v687_v22, %v833_v42  ;;  %v1076_v22 = vsel %vm882_vm3, %v1068_v19, 0 }
 0x250   : > { %v847_v44 = vmul.f32 1.442695, %v843_v43 }
 0x252   : > { %1804 = vpow2.f32 %v847_v44 }
 0x25c   : > { %v1805_v45 = vpop.eup %1804 }
 0x25d   : > { %v855_v46 = vsel %vm646_vm2, %v1805_v45, 0.0 }
 0x25e   : > { %856 = vadd.xlane.f32.xlu0 %v855_v46 }
 0x2bf   : > { %v836_v49 = vpop.xlane.xlu0 %835 }
 0x2c0   : > { %v844_v50 = vsub.f32 %v733_v27, %v836_v49  ;;  %v1122_v27 = vsel %vm882_vm3, %v1069_v24, 0  ;;  %v1800_v24 = vld [vmem:[%s2163_s11] sm:$0xff]  }
 0x2c2   : > { %v849_v51 = vmul.f32 1.442695, %v844_v50 }
 0x2c3   : > { %v839_v52 = vpop.xlane.xlu0 %838 }
 0x2c4   : > { %1806 = vpow2.f32 %v849_v51  ;;  %v845_v53 = vsub.f32 %v779_v32, %v839_v52  ;;  %v1168_v32 = vsel %vm882_vm3, %v1070_v28, 0 }
 0x2c6   : > { %v851_v54 = vmul.f32 1.442695, %v845_v53 }
 0x2c7   : > { %v842_v55 = vpop.xlane.xlu1 %841 }
 0x2c8   : > { %1808 = vpow2.f32 %v851_v54  ;;  %v846_v56 = vsub.f32 %v825_v37, %v842_v55 }
 0x2ca   : > { %v853_v57 = vmul.f32 1.442695, %v846_v56 }
 0x2cc   : > { %1810 = vpow2.f32 %v853_v57 }
 0x2ce   : > { %v1807_v58 = vpop.eup %1806 }
 0x2cf   : > { %v858_v59 = vsel %vm646_vm2, %v1807_v58, 0.0 }
 0x2d0   : > { %859 = vadd.xlane.f32.xlu1 %v858_v59 }
 0x2d2   : > { %v1809_v60 = vpop.eup %1808 }
 0x2d3   : > { %v861_v61 = vsel %vm646_vm2, %v1809_v60, 0.0 }
 0x2d4   : > { %862 = vadd.xlane.f32.xlu0 %v861_v61 }
 0x2d6   : > { %v1811_v62 = vpop.eup %1810 }
 0x2d7   : > { %v864_v63 = vsel %vm646_vm2, %v1811_v62, 0.0 }
 0x2d8   : > { %865 = vadd.xlane.f32.xlu1 %v864_v63 }
 0x2eb   : > { %v857_v4 = vpop.xlane.xlu0 %856 }
 0x2ec   : > { %1812 = vrcp.f32 %v857_v4 }
 0x2f6   : > { %v1813_v5 = vpop.eup %1812 }
 0x2f7   : > { %v871_v7 = vmul.f32 %v1813_v5, %v1805_v45 }
 0x2f9   : > { %v875_v8 = vpack.c.bf16 %v871_v7, %v871_v7 }
 0x2fb   : > { %1702 = vmatmul.mubr.msk.bf16.vlgmr.msra.gmra.mrb[12].mxu1 %vm646_vm2, %v875_v8 }
 0x2fc   : > { %1712 = vmatpush3.bf16.msra.mxu1 %v976_v9  ;;  %1713 = vmatprep.mubr.msk.bf16.mxu1 %vm1849_vm0, %v1848_v1  ;;  %v1613_v9 = vld [vmem:[%s2158_s6] ss:$0 sm:$0xff] }
 0x2fd   : > { %1723 = vmatprep.subr.bf16.mxu1 %v1848_v1 }
 0x35d   : > { %v860_v10 = vpop.xlane.xlu1 %859 }
 0x35e   : > { %1814 = vrcp.f32 %v860_v10 }
 0x361   : > { %v863_v11 = vpop.xlane.xlu0 %862 }
 0x362   : > { %1816 = vrcp.f32 %v863_v11 }
 0x365   : > { %v866_v12 = vpop.xlane.xlu1 %865 }
 0x366   : > { %1818 = vrcp.f32 %v866_v12 }
 0x368   : > { %v1815_v13 = vpop.eup %1814 }
 0x369   : > { %v872_v15 = vmul.f32 %v1815_v13, %v1807_v58  ;;  %v1271_v13 = vunpack.c.l.bf16 %v1974_v3  ;;  %v1799_v3 = vld [vmem:[%s2161_s9 + $0x8] sm:$0xff]  }
 0x36b   : > { %v876_v16 = vpack.c.bf16 %v872_v15, %v872_v15 }
 0x36c   : > { %v1817_v18 = vpop.eup %1816 }
 0x36d   : > { %v873_v20 = vmul.f32 %v1817_v18, %v1809_v60  ;;  %1708 = vmatmul.mubr.msk.bf16.vlgmr.msra.gmra.mrb[8].mxu0 %vm646_vm2, %v876_v16 }
 0x36e   : > { %1718 = vmatpush3.bf16.msra.mxu0 %v1022_v17  ;;  %1719 = vmatprep.mubr.msk.bf16.mxu0 %vm1849_vm0, %v1848_v1 }
 0x36f   : > { %v877_v21 = vpack.c.bf16 %v873_v20, %v873_v20  ;;  %1729 = vmatprep.subr.bf16.mxu0 %v1848_v1 }
 0x370   : > { %v1819_v23 = vpop.eup %1818 }
 0x371   : > { %v874_v25 = vmul.f32 %v1819_v23, %v1811_v62  ;;  %1714 = vmatmul.mubr.msk.bf16.vlgmr.msra.gmra.mrb[16].mxu1 %vm646_vm2, %v877_v21  ;;  %v1798_v23 = vld [vmem:[%s2161_s9] sm:$0xff]  }
 0x372   : > { %1724 = vmatpush3.bf16.msra.mxu1 %v1076_v22  ;;  %1725 = vmatprep.mubr.msk.bf16.mxu1 %vm1849_vm0, %v1848_v1 }
 0x373   : > { %v878_v26 = vpack.c.bf16 %v874_v25, %v874_v25  ;;  %1735 = vmatprep.subr.bf16.mxu1 %v1848_v1  ;;  %v1801_v25 = vld [vmem:[%s2163_s11 + $0x8] sm:$0xff]  }
 0x375   : > { %1720 = vmatmul.mubr.msk.bf16.vlgmr.msra.gmra.mrb[12].mxu0 %vm646_vm2, %v878_v26 }
 0x376   : > { %1730 = vmatpush3.bf16.msra.mxu0 %v1122_v27  ;;  %1731 = vmatprep.mubr.msk.bf16.mxu0 %vm1849_vm0, %v1848_v1 }
 0x377   : > { %1741 = vmatprep.subr.bf16.mxu0 %v1848_v1 }
 0x3ce   : > { %v920_v29 = vpop.f32.mrb[12].mxu1 }
 0x3cf   : > { %v1064_v30 = vpack.c.bf16 %v920_v29, %v920_v29  ;;  %v1703_v31 = vpop.f32.mrb[13].mxu1 }
 0x3d0   : > { %v923_v33 = vpop.f32.mrb[14].mxu1 }
 0x3d1   : > { %v1704_v34 = vpop.f32.mrb[15].mxu1  ;;  %1726 = vmatmul.mubr.msk.bf16.vlgmr.msra.gmra.mrb[20].mxu1 %vm646_vm2, %v1064_v30  ;;  %v1614_v30 = vld [vmem:[%s2159_s7] ss:$0 sm:$0xff] }
 0x3d2   : > { %1736 = vmatpush3.bf16.msra.mxu1 %v1168_v32  ;;  %1737 = vmatprep.mubr.msk.bf16.mxu1 %vm1849_vm0, %v1848_v1  ;;  %v1615_v32 = vld [vmem:[%s2160_s8] ss:$0 sm:$0xff] }
 0x3d3   : > { %1747 = vmatprep.subr.bf16.mxu1 %v1848_v1 }
 0x440   : > { %v966_v36 = vpop.f32.mrb[8].mxu0 }
 0x441   : > { %v1065_v37 = vpack.c.bf16 %v966_v36, %v966_v36  ;;  %v1709_v38 = vpop.f32.mrb[9].mxu0  ;;  %v1802_v36 = vld [vmem:[%s2163_s11 + $0x10] sm:$0xff]  }
 0x442   : > { %v969_v40 = vpop.f32.mrb[10].mxu0  ;;  %v1616_v38 = vld [vmem:[%s2162_s10] ss:$0 sm:$0xff] }
 0x443   : > { %v1710_v41 = vpop.f32.mrb[11].mxu0  ;;  %1732 = vmatmul.mubr.msk.bf16.vlgmr.msra.gmra.mrb[16].mxu0 %vm646_vm2, %v1065_v37  ;;  %v1803_v37 = vld [vmem:[%s2163_s11 + $0x18] sm:$0xff]  }
 0x444   : > { %1742 = vmatpush3.bf16.msra.mxu0 %v1214_v39  ;;  %v1012_v42 = vpop.f32.mrb[16].mxu1  ;;  %1743 = vmatprep.mubr.msk.bf16.mxu0 %vm1849_vm0, %v1848_v1 }
 0x445   : > { %v1066_v43 = vpack.c.bf16 %v1012_v42, %v1012_v42  ;;  %v1715_v44 = vpop.f32.mrb[17].mxu1  ;;  %1755 = vmatprep.subr.bf16.mxu0 %v1848_v1 }
 0x446   : > { %v1015_v45 = vpop.f32.mrb[18].mxu1 }
 0x447   : > { %v1716_v46 = vpop.f32.mrb[19].mxu1  ;;  %1738 = vmatmul.mubr.msk.bf16.vlgmr.msra.gmra.mrb[24].mxu1 %vm646_vm2, %v1066_v43 }
 0x448   : > { %v1058_v47 = vpop.f32.mrb[12].mxu0  ;;  %1751 = vmatprep.mubr.msk.bf16.mxu1 %vm1849_vm0, %v1848_v1  ;;  %1748 = vmatpush3.bf16.msra.mxu1 %v1798_v23 }
 0x449   : > { %v1067_v48 = vpack.c.bf16 %v1058_v47, %v1058_v47  ;;  %v1721_v49 = vpop.f32.mrb[13].mxu0  ;;  %1749 = vmatprep.subr.bf16.mxu1 %v1848_v1 }
 0x44a   : > { %v1061_v50 = vpop.f32.mrb[14].mxu0 }
 0x44b   : > { %v1722_v51 = vpop.f32.mrb[15].mxu0  ;;  %1744 = vmatmul.mubr.msk.bf16.vlgmr.msra.gmra.mrb[20].mxu0 %vm646_vm2, %v1067_v48 }
 0x44c   : > { %1763 = vmatprep.mubr.msk.bf16.mxu0 %vm1849_vm0, %v1848_v1  ;;  %1750 = vmatpush3.bf16.msra.mxu1 %v1799_v3 }
 0x44d   : > { %1756 = vmatpush3.bf16.msra.mxu0 %v1800_v24 }
 0x44e   : > { %1757 = vmatprep.subr.bf16.mxu0 %v1848_v1 }
 0x451   : > { %1758 = vmatpush3.bf16.msra.mxu0 %v1801_v25 }
 0x452   : > { %1759 = vmatprep.subr.bf16.mxu0 %v1848_v1 }
 0x455   : > { %1760 = vmatpush3.bf16.msra.mxu0 %v1802_v36 }
 0x456   : > { %1761 = vmatprep.subr.bf16.mxu0 %v1848_v1  ;;  %v1620_v1 = vld [vmem:[%s2164_s12] ss:$0 sm:$0xff] }
 0x459   : > { %1762 = vmatpush3.bf16.msra.mxu0 %v1803_v37 }
 0x4a4   : > { %v1112_v52 = vpop.f32.mrb[20].mxu1 }
 0x4a5   : > { %v1727_v53 = vpop.f32.mrb[21].mxu1  ;;  %v1256_v57 = vsel %vm594_vm1, %v1112_v52, 0.0 }
 0x4a6   : > { %v1115_v54 = vpop.f32.mrb[22].mxu1 }
 0x4a7   : > { %v1728_v55 = vpop.f32.mrb[23].mxu1 }
 0x516   : > { %v1158_v56 = vpop.f32.mrb[16].mxu0 }
 0x517   : > { %v1257_v58 = vsel %vm594_vm1, %v1158_v56, 0.0  ;;  %v1733_v59 = vpop.f32.mrb[17].mxu0 }
 0x518   : > { %v1258_v60 = vadd.f32 %v1257_v58, %v1256_v57  ;;  %v1161_v61 = vpop.f32.mrb[18].mxu0 }
 0x519   : > { %v1734_v62 = vpop.f32.mrb[19].mxu0 }
 0x51a   : > { %v1204_v63 = vpop.f32.mrb[24].mxu1  ;;  %v1626_v62 = vld [vmem:[%s2165_s13] ss:$0 sm:$0xff] }
 0x51b   : > { %v1259_v0 = vsel %vm594_vm1, %v1204_v63, 0.0  ;;  %v1739_v2 = vpop.f32.mrb[25].mxu1 }
 0x51c   : > { %v1260_v4 = vadd.f32 %v1259_v0, %v1258_v60  ;;  %v1207_v5 = vpop.f32.mrb[26].mxu1  ;;  %v1627_v0 = vld [vmem:[%s2166_s14] ss:$0 sm:$0xff] }
 0x51d   : > { %v1740_v6 = vpop.f32.mrb[27].mxu1 }
 0x51e   : > { %v1250_v7 = vpop.f32.mrb[20].mxu0 }
 0x51f   : > { %v1261_v8 = vsel %vm594_vm1, %v1250_v7, 0.0  ;;  %v1745_v10 = vpop.f32.mrb[21].mxu0 }
 0x520   : > { %v1262_v11 = vadd.f32 %v1261_v8, %v1260_v4  ;;  %v1253_v12 = vpop.f32.mrb[22].mxu0 }
 0x521   : > { %v1746_v14 = vpop.f32.mrb[23].mxu0 }
 0x522   : > { %v1270_v15 = vadd.f32 %v1613_v9, %v1262_v11 }
 0x524   : > { %v1272_v16 = vadd.f32 %v1271_v13, %v1270_v15 }
 0x526   : > { %v1273_v17 = vsel %vm594_vm1, %v1272_v16, 0.0 }
 0x527   : > { %1274 = vadd.xlane.f32.xlu0 %v1273_v17 }
 0x5b4   : > { %v1275_v18 = vpop.xlane.xlu0 %1274 }
 0x5b5   : > { %v1277_v19 = vmul.f32 0.03125, %v1275_v18 }
 0x5b7   : > { %v1278_v20 = vsub.f32 %v1272_v16, %v1277_v19 }
 0x5b9   : > { %v1279_v21 = vmul.f32 %v1278_v20, %v1278_v20 }
 0x5bb   : > { %v1280_v22 = vsel %vm594_vm1, %v1279_v21, 0.0 }
 0x5bc   : > { %1281 = vadd.xlane.f32.xlu1 %v1280_v22 }
 0x649   : > { %v1282_v26 = vpop.xlane.xlu1 %1281 }
 0x64a   : > { %v1283_v27 = vmul.f32 0.03125, %v1282_v26 }
 0x64c   : > { %v1284_v28 = vadd.f32 1e-05, %v1283_v27 }
 0x64e   : > { %1820 = vrsqrt.f32 %v1284_v28 }
 0x658   : > { %v1821_v29 = vpop.eup %1820 }
 0x659   : > { %v1286_v31 = vmul.f32 %v1821_v29, %v1278_v20 }
 0x65b   : > { %v1294_v33 = vmul.f32 %v1614_v30, %v1286_v31 }
 0x65d   : > { %v1302_v34 = vadd.f32 %v1615_v32, %v1294_v33 }
 0x65f   : > { %v1303_v35 = vpack.c.bf16 %v1302_v34, %v1302_v34 }
 0x661   : > { %1752 = vmatmul.mubr.msk.bf16.vlgmr.msra.gmra.mrb[28].mxu1 %vm594_vm1, %v1303_v35 }
 0x734   : > { %v1364_v39 = vpop.f32.mrb[28].mxu1 }
 0x735   : > { %v1365_v40 = vadd.f32 %v1616_v38, %v1364_v39  ;;  %v1753_v41 = vpop.f32.mrb[29].mxu1 }
 0x736   : > { %v1367_v42 = vpop.f32.mrb[30].mxu1 }
 0x737   : > { %v1370_v43 = vmax.f32 %v1365_v40, 0.0  ;;  %v1754_v44 = vpop.f32.mrb[31].mxu1 }
 0x739   : > { %v1371_v45 = vpack.c.bf16 %v1370_v43, %v1370_v43 }
 0x73b   : > { %1764 = vmatmul.mubr.msk.bf16.vlgmr.msra.gmra.mrb[24].mxu0 %vm1411_vm4, %v1371_v45 }
 0x80e   : > { %v1449_v46 = vpop.f32.mrb[24].mxu0 }
 0x80f   : > { %v1450_v47 = vadd.f32 %v1620_v1, %v1449_v46  ;;  %v1765_v48 = vpop.f32.mrb[25].mxu0 }
 0x810   : > { %v1452_v49 = vpop.f32.mrb[26].mxu0 }
 0x811   : > { %v1766_v50 = vpop.f32.mrb[27].mxu0  ;;  %v1455_v51 = vadd.f32 %v1450_v47, %v1302_v34 }
 0x813   : > { %v1456_v52 = vsel %vm594_vm1, %v1455_v51, 0.0 }
 0x814   : > { %1457 = vadd.xlane.f32.xlu0 %v1456_v52 }
 0x8a1   : > { %v1458_v53 = vpop.xlane.xlu0 %1457 }
 0x8a2   : > { %v1459_v54 = vmul.f32 0.03125, %v1458_v53 }
 0x8a4   : > { %v1460_v55 = vsub.f32 %v1455_v51, %v1459_v54 }
 0x8a6   : > { %v1461_v56 = vmul.f32 %v1460_v55, %v1460_v55 }
 0x8a8   : > { %v1462_v57 = vsel %vm594_vm1, %v1461_v56, 0.0 }
 0x8a9   : > { %1463 = vadd.xlane.f32.xlu1 %v1462_v57 }
 0x936   : > { %v1464_v58 = vpop.xlane.xlu1 %1463 }
 0x937   : > { %v1465_v59 = vmul.f32 0.03125, %v1464_v58 }
 0x939   : > { %v1466_v60 = vadd.f32 1e-05, %v1465_v59 }
 0x93b   : > { %1822 = vrsqrt.f32 %v1466_v60 }
 0x945   : > { %v1823_v61 = vpop.eup %1822 }
 0x946   : > { %v1468_v63 = vmul.f32 %v1823_v61, %v1460_v55 }
 0x948   : > { %v1476_v2 = vmul.f32 %v1626_v62, %v1468_v63 }
 0x94a   : > { %v1484_v4 = vadd.f32 %v1627_v0, %v1476_v2 }
 0x94c   : > { %v1485_v5 = vpack.c.bf16 %v1484_v4, %v1484_v4 }
 0x94e   : > { %1487 = vst.msk [vmem:[%s560_s29] sm:$0xf] %vm1486_vm5, %v1485_v5 }
 0x94f PF: > { %s25_s20 = sadd.s32 1, %s1846_s20   ;;  %s2168_s18 = smov %s1842_s19 }
 0x950   : > { %p22_p5 = scmp.ge.s32.totalorder %s25_s20, 4   ;;  %s2169_s19 = smov %s2171_s21 }
 0x952   :  { %24 = sbr.rel (!%p22_p5) target bundleno = 2 (0x2), region = 116 }

</bundles_post_ra>
